<compile_context>
chip_gen: v7x
topology: tpu7x:2x2x1
jax: 0.10.0
libtpu: 0.0.40
codegen_flags: <defaults>
</compile_context>

<pallas_src>
import functools
import math

import jax
import jax.numpy as jnp
from jax.experimental import pallas as pl
from jax.experimental.pallas import tpu as pltpu

M_MARGIN = 4                 # self.m
PI_CONST = 3.14159265        # constant used verbatim in the PyTorch forward
EPS_SMOOTH = 0.1             # torchreid CrossEntropyLoss label-smoothing epsilon
NORM_EPS = 1e-12             # F.normalize eps

# thresholds so that k = sum_j [cos_theta <= cos(j * PI_CONST / m)]
_K_THRESHOLDS = tuple(math.cos(j * PI_CONST / M_MARGIN) for j in range(1, M_MARGIN + 1))


def _round_up(x, m):
    return (x + m - 1) // m * m


def _sphereface_kernel(lab_ref, x_ref, w_ref, loss_ref,
                       xn_sc, xl2_sc, m_sc, l_sc, sum_sc, labcos_sc,
                       *, inv_1p_lamb, num_classes, batch, tile_b, tile_c,
                       has_class_pad):
    bi = pl.program_id(0)
    ci = pl.program_id(1)

    # ---- per-batch-tile init: x normalization hoisted off the class-reduction axis
    @pl.when(ci == 0)
    def _init():
        x = x_ref[...].astype(jnp.float32)                       # (tile_b, D)
        x_sq = jnp.sum(x * x, axis=1, keepdims=True)
        xl2_sc[...] = jnp.sqrt(x_sq)                             # NormOfFeature
        inv_norm = jax.lax.rsqrt(jnp.maximum(x_sq, NORM_EPS * NORM_EPS))
        xn_sc[...] = (x * inv_norm).astype(jnp.bfloat16)         # F.normalize(input)
        m_sc[...] = jnp.full_like(m_sc, -jnp.inf)
        l_sc[...] = jnp.zeros_like(l_sc)
        sum_sc[...] = jnp.zeros_like(sum_sc)
        labcos_sc[...] = jnp.zeros_like(labcos_sc)

    # ---- cos_theta = normalize(x) @ normalize(W)^T  (bf16 MXU, f32 accumulation)
    cos = jnp.dot(xn_sc[...], w_ref[...], preferred_element_type=jnp.float32)
    cos = jnp.clip(cos, -1.0, 1.0)                               # (tile_b, tile_c)
    logits = cos * xl2_sc[...]                                   # plain (un-margined)

    lane = jax.lax.broadcasted_iota(jnp.int32, (tile_b, tile_c), 1)

    # ---- accumulate the per-row label cosine; margin math deferred to finalize
    is_label = lane == (lab_ref[...] - ci * tile_c)
    labcos_sc[...] += jnp.sum(jnp.where(is_label, cos, 0.0), axis=1, keepdims=True)

    # ---- online logsumexp over plain logits (mask padded class cols only if present)
    if has_class_pad:
        lse_in = jnp.where(lane < (num_classes - ci * tile_c), logits, -jnp.inf)
    else:
        lse_in = logits
    tile_max = jnp.max(lse_in, axis=1, keepdims=True)
    m_new = jnp.maximum(m_sc[...], tile_max)
    alpha = jnp.exp(m_sc[...] - m_new)
    l_sc[...] = alpha * l_sc[...] + jnp.sum(jnp.exp(lse_in - m_new),
                                            axis=1, keepdims=True)
    m_sc[...] = m_new

    # padded class columns are exactly zero (zero weight cols) -> contribute 0 here
    sum_sc[...] += jnp.sum(logits, axis=1, keepdims=True)

    # ---- finalize per-row label-smoothed CE at the last class tile
    @pl.when(ci == pl.num_programs(1) - 1)
    def _finalize():
        xl2 = xl2_sc[...]
        cos_lab = labcos_sc[...]                                 # clamped label cosine

        # margin transform on the label column only: cos(4θ) = 8c^4 - 8c^2 + 1
        c2 = cos_lab * cos_lab
        cos_m = 8.0 * c2 * c2 - 8.0 * c2 + 1.0
        k = jnp.zeros(cos_lab.shape, jnp.int32)
        for thr in _K_THRESHOLDS:                                # k = floor(4*acos/PI)
            k = k + (cos_lab <= jnp.float32(thr)).astype(jnp.int32)
        sign = 1.0 - 2.0 * (k & 1).astype(jnp.float32)           # (-1)^k
        phi = sign * cos_m - 2.0 * k.astype(jnp.float32)

        plain_lab = cos_lab * xl2                                # un-margined label logit
        true_lab = ((phi - cos_lab) * jnp.float32(inv_1p_lamb) + cos_lab) * xl2

        m = m_sc[...]
        # swap the label column inside the running exp-sum (true_lab <= plain_lab <= m)
        l_corr = (jnp.maximum(l_sc[...] - jnp.exp(plain_lab - m), 0.0)
                  + jnp.exp(true_lab - m))
        lse = m + jnp.log(l_corr)
        sum_corr = sum_sc[...] + (true_lab - plain_lab)

        loss_row = (lse
                    - (1.0 - EPS_SMOOTH) * true_lab
                    - (EPS_SMOOTH / num_classes) * sum_corr)
        row_ids = bi * tile_b + jax.lax.broadcasted_iota(jnp.int32, (tile_b, 1), 0)
        loss_ref[...] = jnp.where(row_ids < batch, loss_row, 0.0)  # zero padded rows


def sphereface_loss(x, weight, labels, iteration, *,
                    tile_b=256, tile_c=1024, min_batch_tiles=1):
    """x: (B, in_features) f32; weight: (out_features, in_features) f32;
    labels: (B,) int; iteration: the module's self.iter AFTER the increment.
    On v7x pass min_batch_tiles=2 so the 'parallel' batch axis shards across both TCs."""
    batch, dim = x.shape
    num_classes = weight.shape[0]

    # lamb = max(LambdaMin, base * (1 + gamma * iter) ** (-power))
    lamb = max(5.0, 1000.0 * (1.0 + 0.12 * iteration) ** (-1.0))
    inv_1p_lamb = 1.0 / (1.0 + lamb)

    # Batch tiles x16 (bf16 sublane pack of xn scratch), class tiles x128 (lane/MXU).
    b_ceil = _round_up(batch, 16)
    tile_b = min(tile_b, b_ceil)
    if min_batch_tiles > 1:
        tile_b = min(tile_b, max(16, _round_up(-(-b_ceil // min_batch_tiles), 16)))
    tile_c = min(tile_c, _round_up(num_classes, 128))
    b_pad = _round_up(batch, tile_b)
    c_pad = _round_up(num_classes, tile_c)

    # Pre-normalized, bf16, pre-transposed (D, C) weight streamed through VMEM.
    w32 = weight.astype(jnp.float32)
    w_sq = jnp.sum(w32 * w32, axis=1, keepdims=True)
    wn = (w32 * jax.lax.rsqrt(jnp.maximum(w_sq, NORM_EPS * NORM_EPS))
          ).astype(jnp.bfloat16)
    w_t = jnp.pad(wn.T, ((0, 0), (0, c_pad - num_classes)))      # (D, c_pad), zeros pad

    x_p = jnp.pad(x, ((0, b_pad - batch), (0, 0)))
    lab2d = jnp.pad(labels.astype(jnp.int32), (0, b_pad - batch)).reshape(b_pad, 1)

    grid = (b_pad // tile_b, c_pad // tile_c)

    kernel = functools.partial(
        _sphereface_kernel, inv_1p_lamb=float(inv_1p_lamb),
        num_classes=num_classes, batch=batch, tile_b=tile_b, tile_c=tile_c,
        has_class_pad=(c_pad != num_classes))

    # VMEM budget from actual buffer sizes (double-buffered inputs + scratch +
    # headroom for the (tile_b, tile_c) f32 intermediates); capped for v7x's 64 MiB.
    w_bufs = 2 * dim * tile_c * 2                                # bf16 weight tiles
    x_bufs = 2 * tile_b * dim * 4
    small_bufs = 4 * tile_b * 128 * 4                            # labels + loss (lane pad)
    scratch = tile_b * dim * 2 + 5 * tile_b * 128 * 4
    interm = 6 * tile_b * tile_c * 4                             # cos/logits/exp temps
    vmem_limit = min(max(int(1.5 * (w_bufs + x_bufs + small_bufs + scratch + interm))
                         + (4 << 20), 16 << 20), 48 << 20)

    flops = 2 * b_pad * c_pad * dim                              # MXU work
    bytes_accessed = (x_p.size * 4                               # x read once
                      + grid[0] * w_t.size * 2                   # bf16 weight per b-tile
                      + lab2d.size * 4 + b_pad * 4)

    per_row = pl.pallas_call(
        kernel,
        out_shape=jax.ShapeDtypeStruct((b_pad, 1), jnp.float32),
        grid_spec=pltpu.PrefetchScalarGridSpec(
            num_scalar_prefetch=0,
            grid=grid,
            in_specs=[
                pl.BlockSpec((tile_b, 1), lambda b, c: (b, 0)),     # labels
                pl.BlockSpec((tile_b, dim), lambda b, c: (b, 0)),   # x (resident over c)
                pl.BlockSpec((dim, tile_c), lambda b, c: (0, c)),   # normalized W^T bf16
            ],
            out_specs=pl.BlockSpec((tile_b, 1), lambda b, c: (b, 0)),
            scratch_shapes=[
                pltpu.VMEM((tile_b, dim), jnp.bfloat16),   # normalized x (bf16 MXU lhs)
                pltpu.VMEM((tile_b, 1), jnp.float32),      # ||x||_2
                pltpu.VMEM((tile_b, 1), jnp.float32),      # running max
                pltpu.VMEM((tile_b, 1), jnp.float32),      # running sum(exp)
                pltpu.VMEM((tile_b, 1), jnp.float32),      # running sum of plain logits
                pltpu.VMEM((tile_b, 1), jnp.float32),      # label cosine
            ]),
        compiler_params=pltpu.CompilerParams(
            dimension_semantics=("parallel", "arbitrary"),
            vmem_limit_bytes=vmem_limit),
        cost_estimate=pl.CostEstimate(
            flops=int(flops),
            transcendentals=int(b_pad * c_pad),
            bytes_accessed=int(bytes_accessed)),
    )(lab2d, x_p, w_t)

    # label-smoothed CE: (-t * log_softmax).mean(0).sum(); padded rows already zeroed.
    return jnp.sum(per_row) / batch


def _sphereface_reference(x, weight, labels, iteration):
    """Pure-JAX mirror of the PyTorch forward + torchreid label-smoothing CE."""
    lamb = max(5.0, 1000.0 * (1.0 + 0.12 * iteration) ** (-1.0))
    num_classes = weight.shape[0]
    xn = x / jnp.maximum(jnp.linalg.norm(x, axis=1, keepdims=True), NORM_EPS)
    wn = weight / jnp.maximum(jnp.linalg.norm(weight, axis=1, keepdims=True), NORM_EPS)
    cos = jnp.clip(jnp.dot(xn, wn.T, precision=jax.lax.Precision.HIGHEST), -1.0, 1.0)
    cos_m = 8.0 * cos ** 4 - 8.0 * cos ** 2 + 1.0
    theta = jnp.arccos(cos)
    k = jnp.floor(M_MARGIN * theta / PI_CONST)
    sign = 1.0 - 2.0 * jnp.mod(k, 2.0)
    phi = sign * cos_m - 2.0 * k
    nf = jnp.linalg.norm(x, axis=1, keepdims=True)
    one_hot = jax.nn.one_hot(labels, num_classes, dtype=jnp.float32)
    out = (one_hot * (phi - cos) / (1.0 + lamb) + cos) * nf
    logp = jax.nn.log_softmax(out, axis=1)
    t = (1.0 - EPS_SMOOTH) * one_hot + EPS_SMOOTH / num_classes
    return (-t * logp).sum(axis=1).mean()


if __name__ == "__main__":
    B, IN_FEATURES, OUT_FEATURES = 8, 32, 16

    key = jax.random.PRNGKey(0)
    kx, kw, kl = jax.random.split(key, 3)

    x = jax.random.normal(kx, (B, IN_FEATURES), dtype=jnp.float32)

    # nn.init.xavier_uniform on a (out_features, in_features) weight
    bound = math.sqrt(6.0 / (IN_FEATURES + OUT_FEATURES))
    weight = jax.random.uniform(
        kw, (OUT_FEATURES, IN_FEATURES), minval=-bound, maxval=bound,
        dtype=jnp.float32)

    labels = jax.random.randint(kl, (B,), 0, OUT_FEATURES, dtype=jnp.int32)

    # forward increments self.iter from 0 -> 1 before computing lamb
    loss = sphereface_loss(x, weight, labels, iteration=1)
    loss = jax.block_until_ready(loss)

    ref = jax.block_until_ready(_sphereface_reference(x, weight, labels, iteration=1))
    assert abs(float(loss) - float(ref)) <= 5e-2 + 5e-2 * abs(float(ref)), (
        "kernel/reference mismatch", float(loss), float(ref))

    print("KERNEL_OK")
</pallas_src>

<mosaic_0001>
module attributes {stable_mosaic.version = 11 : i64} {
  func.func @_sphereface_kernel(%arg0: i32, %arg1: i32, %arg2: memref<16x1xi32, #tpu.memory_space<vmem>>, %arg3: memref<16x32xf32, #tpu.memory_space<vmem>>, %arg4: memref<32x128xbf16, #tpu.memory_space<vmem>>, %arg5: memref<16x1xf32, #tpu.memory_space<vmem>>, %arg6: memref<16x32xbf16, #tpu.memory_space<vmem>>, %arg7: memref<16x1xf32, #tpu.memory_space<vmem>>, %arg8: memref<16x1xf32, #tpu.memory_space<vmem>>, %arg9: memref<16x1xf32, #tpu.memory_space<vmem>>, %arg10: memref<16x1xf32, #tpu.memory_space<vmem>>, %arg11: memref<16x1xf32, #tpu.memory_space<vmem>>) attributes {dimension_semantics = [#tpu.dimension_semantics<parallel>, #tpu.dimension_semantics<arbitrary>], iteration_bounds = array<i64: 1, 1>, scalar_prefetch = 0 : i64, scratch_operands = 6 : i64, tpu.core_type = #tpu.core_type<tc>, window_params = [{transform_indices = @transform_0, window_bounds = array<i64: 16, 1>}, {transform_indices = @transform_1, window_bounds = array<i64: 16, 32>}, {transform_indices = @transform_2, window_bounds = array<i64: 32, 128>}, {transform_indices = @transform_3, window_bounds = array<i64: 16, 1>}]} {
    %c0_i32 = arith.constant 0 : i32
    %0 = arith.cmpi eq, %arg1, %c0_i32 : i32
    %1 = arith.extui %0 : i1 to i32
    %c0_i32_0 = arith.constant 0 : i32
    %2 = arith.cmpi ne, %1, %c0_i32_0 : i32
    scf.if %2 {
      %c0_37 = arith.constant 0 : index
      %c0_38 = arith.constant 0 : index
      %58 = vector.load %arg3[%c0_37, %c0_38] : memref<16x32xf32, #tpu.memory_space<vmem>>, vector<16x32xf32>
      %59 = arith.mulf %58, %58 : vector<16x32xf32>
      %cst_39 = arith.constant dense<0.000000e+00> : vector<16xf32>
      %60 = vector.multi_reduction <add>, %59, %cst_39 [1] : vector<16x32xf32> to vector<16xf32>
      %61 = vector.shape_cast %60 : vector<16xf32> to vector<16x1xf32>
      %62 = math.sqrt %61 : vector<16x1xf32>
      %c0_40 = arith.constant 0 : index
      %c0_41 = arith.constant 0 : index
      %63 = vector.load %arg7[%c0_40, %c0_41] : memref<16x1xf32, #tpu.memory_space<vmem>>, vector<16x1xf32>
      tpu.vector_store %arg7[%c0_40, %c0_41], %62 {strides = array<i32>} : memref<16x1xf32, #tpu.memory_space<vmem>>, vector<16x1xf32>,
      %cst_42 = arith.constant 1.000000e-24 : f32
      %64 = vector.broadcast %cst_42 : f32 to vector<16x1xf32>
      %65 = arith.maximumf %61, %64 : vector<16x1xf32>
      %66 = math.rsqrt %65 : vector<16x1xf32>
      %67 = vector.broadcast %66 : vector<16x1xf32> to vector<16x32xf32>
      %68 = arith.mulf %58, %67 : vector<16x32xf32>
      %69 = arith.truncf %68 : vector<16x32xf32> to vector<16x32xbf16>
      %c0_43 = arith.constant 0 : index
      %c0_44 = arith.constant 0 : index
      %70 = vector.load %arg6[%c0_43, %c0_44] : memref<16x32xbf16, #tpu.memory_space<vmem>>, vector<16x32xbf16>
      tpu.vector_store %arg6[%c0_43, %c0_44], %69 {strides = array<i32>} : memref<16x32xbf16, #tpu.memory_space<vmem>>, vector<16x32xbf16>,
      %cst_45 = arith.constant 0xFF800000 : f32
      %71 = vector.broadcast %cst_45 : f32 to vector<16x1xf32>
      %c0_46 = arith.constant 0 : index
      %c0_47 = arith.constant 0 : index
      %72 = vector.load %arg8[%c0_46, %c0_47] : memref<16x1xf32, #tpu.memory_space<vmem>>, vector<16x1xf32>
      tpu.vector_store %arg8[%c0_46, %c0_47], %71 {strides = array<i32>} : memref<16x1xf32, #tpu.memory_space<vmem>>, vector<16x1xf32>,
      %cst_48 = arith.constant 0.000000e+00 : f32
      %73 = vector.broadcast %cst_48 : f32 to vector<16x1xf32>
      %c0_49 = arith.constant 0 : index
      %c0_50 = arith.constant 0 : index
      %74 = vector.load %arg9[%c0_49, %c0_50] : memref<16x1xf32, #tpu.memory_space<vmem>>, vector<16x1xf32>
      tpu.vector_store %arg9[%c0_49, %c0_50], %73 {strides = array<i32>} : memref<16x1xf32, #tpu.memory_space<vmem>>, vector<16x1xf32>,
      %cst_51 = arith.constant 0.000000e+00 : f32
      %75 = vector.broadcast %cst_51 : f32 to vector<16x1xf32>
      %c0_52 = arith.constant 0 : index
      %c0_53 = arith.constant 0 : index
      %76 = vector.load %arg10[%c0_52, %c0_53] : memref<16x1xf32, #tpu.memory_space<vmem>>, vector<16x1xf32>
      tpu.vector_store %arg10[%c0_52, %c0_53], %75 {strides = array<i32>} : memref<16x1xf32, #tpu.memory_space<vmem>>, vector<16x1xf32>,
      %cst_54 = arith.constant 0.000000e+00 : f32
      %77 = vector.broadcast %cst_54 : f32 to vector<16x1xf32>
      %c0_55 = arith.constant 0 : index
      %c0_56 = arith.constant 0 : index
      %78 = vector.load %arg11[%c0_55, %c0_56] : memref<16x1xf32, #tpu.memory_space<vmem>>, vector<16x1xf32>
      tpu.vector_store %arg11[%c0_55, %c0_56], %77 {strides = array<i32>} : memref<16x1xf32, #tpu.memory_space<vmem>>, vector<16x1xf32>,
    } else {
    }
    %c0 = arith.constant 0 : index
    %c0_1 = arith.constant 0 : index
    %3 = vector.load %arg6[%c0, %c0_1] : memref<16x32xbf16, #tpu.memory_space<vmem>>, vector<16x32xbf16>
    %c0_2 = arith.constant 0 : index
    %c0_3 = arith.constant 0 : index
    %4 = vector.load %arg4[%c0_2, %c0_3] : memref<32x128xbf16, #tpu.memory_space<vmem>>, vector<32x128xbf16>
    %cst = arith.constant dense<0.000000e+00> : vector<16x128xf32>
    %5 = tpu.matmul %3, %4, %cst {dimension_numbers = #tpu.dot_dimension_numbers<[1], [0], [0], [1], [0, 0, 1, 1], [], []>} : vector<16x32xbf16>, vector<32x128xbf16>, vector<16x128xf32> -> vector<16x128xf32>
    %cst_4 = arith.constant -1.000000e+00 : f32
    %cst_5 = arith.constant 1.000000e+00 : f32
    %6 = vector.broadcast %cst_4 : f32 to vector<16x128xf32>
    %7 = arith.maximumf %6, %5 : vector<16x128xf32>
    %8 = vector.broadcast %cst_5 : f32 to vector<16x128xf32>
    %9 = arith.minimumf %8, %7 : vector<16x128xf32>
    %c0_6 = arith.constant 0 : index
    %c0_7 = arith.constant 0 : index
    %10 = vector.load %arg7[%c0_6, %c0_7] : memref<16x1xf32, #tpu.memory_space<vmem>>, vector<16x1xf32>
    %11 = vector.broadcast %10 : vector<16x1xf32> to vector<16x128xf32>
    %12 = arith.mulf %9, %11 : vector<16x128xf32>
    %13 = tpu.iota {dimensions = array<i32: 1>} : vector<16x128xi32>
    %c0_8 = arith.constant 0 : index
    %c0_9 = arith.constant 0 : index
    %14 = vector.load %arg2[%c0_8, %c0_9] : memref<16x1xi32, #tpu.memory_space<vmem>>, vector<16x1xi32>
    %c128_i32 = arith.constant 128 : i32
    %15 = arith.muli %arg1, %c128_i32 : i32
    %16 = vector.broadcast %15 : i32 to vector<16x1xi32>
    %17 = arith.subi %14, %16 : vector<16x1xi32>
    %18 = vector.broadcast %17 : vector<16x1xi32> to vector<16x128xi32>
    %19 = arith.cmpi eq, %13, %18 : vector<16x128xi32>
    %c0_10 = arith.constant 0 : index
    %c0_11 = arith.constant 0 : index
    %20 = vector.load %arg11[%c0_10, %c0_11] : memref<16x1xf32, #tpu.memory_space<vmem>>, vector<16x1xf32>
    %cst_12 = arith.constant 0.000000e+00 : f32
    %21 = vector.broadcast %cst_12 : f32 to vector<16x128xf32>
    %22 = arith.select %19, %9, %21 : vector<16x128xi1>, vector<16x128xf32>
    %cst_13 = arith.constant dense<0.000000e+00> : vector<16xf32>
    %23 = vector.multi_reduction <add>, %22, %cst_13 [1] : vector<16x128xf32> to vector<16xf32>
    %24 = vector.shape_cast %23 : vector<16xf32> to vector<16x1xf32>
    %25 = arith.addf %20, %24 : vector<16x1xf32>
    %c0_14 = arith.constant 0 : index
    %c0_15 = arith.constant 0 : index
    %26 = vector.load %arg11[%c0_14, %c0_15] : memref<16x1xf32, #tpu.memory_space<vmem>>, vector<16x1xf32>
    tpu.vector_store %arg11[%c0_14, %c0_15], %25 {strides = array<i32>} : memref<16x1xf32, #tpu.memory_space<vmem>>, vector<16x1xf32>,
    %c128_i32_16 = arith.constant 128 : i32
    %27 = arith.muli %arg1, %c128_i32_16 : i32
    %c16_i32 = arith.constant 16 : i32
    %28 = arith.subi %c16_i32, %27 : i32
    %29 = vector.broadcast %28 : i32 to vector<16x128xi32>
    %30 = arith.cmpi slt, %13, %29 : vector<16x128xi32>
    %cst_17 = arith.constant 0xFF800000 : f32
    %31 = vector.broadcast %cst_17 : f32 to vector<16x128xf32>
    %32 = arith.select %30, %12, %31 : vector<16x128xi1>, vector<16x128xf32>
    %cst_18 = arith.constant dense<0xFF800000> : vector<16xf32>
    %33 = vector.multi_reduction <maximumf>, %32, %cst_18 [1] : vector<16x128xf32> to vector<16xf32>
    %34 = vector.shape_cast %33 : vector<16xf32> to vector<16x1xf32>
    %c0_19 = arith.constant 0 : index
    %c0_20 = arith.constant 0 : index
    %35 = vector.load %arg8[%c0_19, %c0_20] : memref<16x1xf32, #tpu.memory_space<vmem>>, vector<16x1xf32>
    %36 = arith.maximumf %35, %34 : vector<16x1xf32>
    %c0_21 = arith.constant 0 : index
    %c0_22 = arith.constant 0 : index
    %37 = vector.load %arg8[%c0_21, %c0_22] : memref<16x1xf32, #tpu.memory_space<vmem>>, vector<16x1xf32>
    %38 = arith.subf %37, %36 : vector<16x1xf32>
    %39 = math.exp %38 : vector<16x1xf32>
    %c0_23 = arith.constant 0 : index
    %c0_24 = arith.constant 0 : index
    %40 = vector.load %arg9[%c0_23, %c0_24] : memref<16x1xf32, #tpu.memory_space<vmem>>, vector<16x1xf32>
    %41 = arith.mulf %39, %40 : vector<16x1xf32>
    %42 = vector.broadcast %36 : vector<16x1xf32> to vector<16x128xf32>
    %43 = arith.subf %32, %42 : vector<16x128xf32>
    %44 = math.exp %43 : vector<16x128xf32>
    %cst_25 = arith.constant dense<0.000000e+00> : vector<16xf32>
    %45 = vector.multi_reduction <add>, %44, %cst_25 [1] : vector<16x128xf32> to vector<16xf32>
    %46 = vector.shape_cast %45 : vector<16xf32> to vector<16x1xf32>
    %47 = arith.addf %41, %46 : vector<16x1xf32>
    %c0_26 = arith.constant 0 : index
    %c0_27 = arith.constant 0 : index
    %48 = vector.load %arg9[%c0_26, %c0_27] : memref<16x1xf32, #tpu.memory_space<vmem>>, vector<16x1xf32>
    tpu.vector_store %arg9[%c0_26, %c0_27], %47 {strides = array<i32>} : memref<16x1xf32, #tpu.memory_space<vmem>>, vector<16x1xf32>,
    %c0_28 = arith.constant 0 : index
    %c0_29 = arith.constant 0 : index
    %49 = vector.load %arg8[%c0_28, %c0_29] : memref<16x1xf32, #tpu.memory_space<vmem>>, vector<16x1xf32>
    tpu.vector_store %arg8[%c0_28, %c0_29], %36 {strides = array<i32>} : memref<16x1xf32, #tpu.memory_space<vmem>>, vector<16x1xf32>,
    %c0_30 = arith.constant 0 : index
    %c0_31 = arith.constant 0 : index
    %50 = vector.load %arg10[%c0_30, %c0_31] : memref<16x1xf32, #tpu.memory_space<vmem>>, vector<16x1xf32>
    %cst_32 = arith.constant dense<0.000000e+00> : vector<16xf32>
    %51 = vector.multi_reduction <add>, %12, %cst_32 [1] : vector<16x128xf32> to vector<16xf32>
    %52 = vector.shape_cast %51 : vector<16xf32> to vector<16x1xf32>
    %53 = arith.addf %50, %52 : vector<16x1xf32>
    %c0_33 = arith.constant 0 : index
    %c0_34 = arith.constant 0 : index
    %54 = vector.load %arg10[%c0_33, %c0_34] : memref<16x1xf32, #tpu.memory_space<vmem>>, vector<16x1xf32>
    tpu.vector_store %arg10[%c0_33, %c0_34], %53 {strides = array<i32>} : memref<16x1xf32, #tpu.memory_space<vmem>>, vector<16x1xf32>,
    %c0_i32_35 = arith.constant 0 : i32
    %55 = arith.cmpi eq, %arg1, %c0_i32_35 : i32
    %56 = arith.extui %55 : i1 to i32
    %c0_i32_36 = arith.constant 0 : i32
    %57 = arith.cmpi ne, %56, %c0_i32_36 : i32
    scf.if %57 {
      %c0_37 = arith.constant 0 : index
      %c0_38 = arith.constant 0 : index
      %58 = vector.load %arg7[%c0_37, %c0_38] : memref<16x1xf32, #tpu.memory_space<vmem>>, vector<16x1xf32>
      %c0_39 = arith.constant 0 : index
      %c0_40 = arith.constant 0 : index
      %59 = vector.load %arg11[%c0_39, %c0_40] : memref<16x1xf32, #tpu.memory_space<vmem>>, vector<16x1xf32>
      %60 = arith.mulf %59, %59 : vector<16x1xf32>
      %cst_41 = arith.constant 8.000000e+00 : f32
      %61 = vector.broadcast %cst_41 : f32 to vector<16x1xf32>
      %62 = arith.mulf %61, %60 : vector<16x1xf32>
      %63 = arith.mulf %62, %60 : vector<16x1xf32>
      %cst_42 = arith.constant 8.000000e+00 : f32
      %64 = vector.broadcast %cst_42 : f32 to vector<16x1xf32>
      %65 = arith.mulf %64, %60 : vector<16x1xf32>
      %66 = arith.subf %63, %65 : vector<16x1xf32>
      %cst_43 = arith.constant 1.000000e+00 : f32
      %67 = vector.broadcast %cst_43 : f32 to vector<16x1xf32>
      %68 = arith.addf %66, %67 : vector<16x1xf32>
      %c0_i32_44 = arith.constant 0 : i32
      %69 = vector.broadcast %c0_i32_44 : i32 to vector<16x1xi32>
      %cst_45 = arith.constant 0.707106769 : f32
      %70 = vector.broadcast %cst_45 : f32 to vector<16x1xf32>
      %71 = arith.cmpf ole, %59, %70 : vector<16x1xf32>
      %72 = arith.extui %71 : vector<16x1xi1> to vector<16x1xi32>
      %73 = arith.addi %69, %72 : vector<16x1xi32>
      %cst_46 = arith.constant 1.79489656E-9 : f32
      %74 = vector.broadcast %cst_46 : f32 to vector<16x1xf32>
      %75 = arith.cmpf ole, %59, %74 : vector<16x1xf32>
      %76 = arith.extui %75 : vector<16x1xi1> to vector<16x1xi32>
      %77 = arith.addi %73, %76 : vector<16x1xi32>
      %cst_47 = arith.constant -0.707106769 : f32
      %78 = vector.broadcast %cst_47 : f32 to vector<16x1xf32>
      %79 = arith.cmpf ole, %59, %78 : vector<16x1xf32>
      %80 = arith.extui %79 : vector<16x1xi1> to vector<16x1xi32>
      %81 = arith.addi %77, %80 : vector<16x1xi32>
      %cst_48 = arith.constant -1.000000e+00 : f32
      %82 = vector.broadcast %cst_48 : f32 to vector<16x1xf32>
      %83 = arith.cmpf ole, %59, %82 : vector<16x1xf32>
      %84 = arith.extui %83 : vector<16x1xi1> to vector<16x1xi32>
      %85 = arith.addi %81, %84 : vector<16x1xi32>
      %c1_i32 = arith.constant 1 : i32
      %86 = vector.broadcast %c1_i32 : i32 to vector<16x1xi32>
      %87 = arith.andi %85, %86 : vector<16x1xi32>
      %88 = arith.sitofp %87 : vector<16x1xi32> to vector<16x1xf32>
      %cst_49 = arith.constant 2.000000e+00 : f32
      %89 = vector.broadcast %cst_49 : f32 to vector<16x1xf32>
      %90 = arith.mulf %89, %88 : vector<16x1xf32>
      %cst_50 = arith.constant 1.000000e+00 : f32
      %91 = vector.broadcast %cst_50 : f32 to vector<16x1xf32>
      %92 = arith.subf %91, %90 : vector<16x1xf32>
      %93 = arith.mulf %92, %68 : vector<16x1xf32>
      %94 = arith.sitofp %85 : vector<16x1xi32> to vector<16x1xf32>
      %cst_51 = arith.constant 2.000000e+00 : f32
      %95 = vector.broadcast %cst_51 : f32 to vector<16x1xf32>
      %96 = arith.mulf %95, %94 : vector<16x1xf32>
      %97 = arith.subf %93, %96 : vector<16x1xf32>
      %98 = arith.mulf %59, %58 : vector<16x1xf32>
      %99 = arith.subf %97, %59 : vector<16x1xf32>
      %cst_52 = arith.constant 0.00111874705 : f32
      %100 = vector.broadcast %cst_52 : f32 to vector<16x1xf32>
      %101 = arith.mulf %99, %100 : vector<16x1xf32>
      %102 = arith.addf %101, %59 : vector<16x1xf32>
      %103 = arith.mulf %102, %58 : vector<16x1xf32>
      %c0_53 = arith.constant 0 : index
      %c0_54 = arith.constant 0 : index
      %104 = vector.load %arg8[%c0_53, %c0_54] : memref<16x1xf32, #tpu.memory_space<vmem>>, vector<16x1xf32>
      %c0_55 = arith.constant 0 : index
      %c0_56 = arith.constant 0 : index
      %105 = vector.load %arg9[%c0_55, %c0_56] : memref<16x1xf32, #tpu.memory_space<vmem>>, vector<16x1xf32>
      %106 = arith.subf %98, %104 : vector<16x1xf32>
      %107 = math.exp %106 : vector<16x1xf32>
      %108 = arith.subf %105, %107 : vector<16x1xf32>
      %cst_57 = arith.constant 0.000000e+00 : f32
      %109 = vector.broadcast %cst_57 : f32 to vector<16x1xf32>
      %110 = arith.maximumf %108, %109 : vector<16x1xf32>
      %111 = arith.subf %103, %104 : vector<16x1xf32>
      %112 = math.exp %111 : vector<16x1xf32>
      %113 = arith.addf %110, %112 : vector<16x1xf32>
      %114 = math.log %113 : vector<16x1xf32>
      %115 = arith.addf %104, %114 : vector<16x1xf32>
      %c0_58 = arith.constant 0 : index
      %c0_59 = arith.constant 0 : index
      %116 = vector.load %arg10[%c0_58, %c0_59] : memref<16x1xf32, #tpu.memory_space<vmem>>, vector<16x1xf32>
      %117 = arith.subf %103, %98 : vector<16x1xf32>
      %118 = arith.addf %116, %117 : vector<16x1xf32>
      %cst_60 = arith.constant 0.899999976 : f32
      %119 = vector.broadcast %cst_60 : f32 to vector<16x1xf32>
      %120 = arith.mulf %119, %103 : vector<16x1xf32>
      %121 = arith.subf %115, %120 : vector<16x1xf32>
      %cst_61 = arith.constant 6.250000e-03 : f32
      %122 = vector.broadcast %cst_61 : f32 to vector<16x1xf32>
      %123 = arith.mulf %122, %118 : vector<16x1xf32>
      %124 = arith.subf %121, %123 : vector<16x1xf32>
      %c16_i32_62 = arith.constant 16 : i32
      %125 = arith.muli %arg0, %c16_i32_62 : i32
      %126 = tpu.iota {dimensions = array<i32: 0>} : vector<16x1xi32>
      %127 = vector.broadcast %125 : i32 to vector<16x1xi32>
      %128 = arith.addi %127, %126 : vector<16x1xi32>
      %c8_i32 = arith.constant 8 : i32
      %129 = vector.broadcast %c8_i32 : i32 to vector<16x1xi32>
      %130 = arith.cmpi slt, %128, %129 : vector<16x1xi32>
      %cst_63 = arith.constant 0.000000e+00 : f32
      %131 = vector.broadcast %cst_63 : f32 to vector<16x1xf32>
      %132 = arith.select %130, %124, %131 : vector<16x1xi1>, vector<16x1xf32>
      %c0_64 = arith.constant 0 : index
      %c0_65 = arith.constant 0 : index
      %133 = vector.load %arg5[%c0_64, %c0_65] : memref<16x1xf32, #tpu.memory_space<vmem>>, vector<16x1xf32>
      tpu.vector_store %arg5[%c0_64, %c0_65], %132 {strides = array<i32>} : memref<16x1xf32, #tpu.memory_space<vmem>>, vector<16x1xf32>,
    } else {
    }
    return
  }
  func.func @transform_0(%arg0: i32, %arg1: i32) -> (i32, i32) {
    %c0_i32 = arith.constant 0 : i32
    %c0_i32_0 = arith.constant 0 : i32
    return %arg0, %c0_i32 : i32, i32
  }
  func.func @transform_1(%arg0: i32, %arg1: i32) -> (i32, i32) {
    %c0_i32 = arith.constant 0 : i32
    %c0_i32_0 = arith.constant 0 : i32
    return %arg0, %c0_i32 : i32, i32
  }
  func.func @transform_2(%arg0: i32, %arg1: i32) -> (i32, i32) {
    %c0_i32 = arith.constant 0 : i32
    %c0_i32_0 = arith.constant 0 : i32
    return %c0_i32, %arg1 : i32, i32
  }
  func.func @transform_3(%arg0: i32, %arg1: i32) -> (i32, i32) {
    %c0_i32 = arith.constant 0 : i32
    %c0_i32_0 = arith.constant 0 : i32
    return %arg0, %c0_i32 : i32, i32
  }
}

</mosaic_0001>

<bundles_post_ra>
// kernel: tpu_custom_call.1
= control target key start
LH: loop header
LB: loop body
LE: loop exit
PB: predicated region body
PF: predicated region fallthrough
CT: control target
= control target key end

     0   :  { %8 = vsyncpa [#allocation9], 0  ;;  %s443_s12 = smov [#allocation8]   ;;  %s556_s0 = inlined_call_operand.vmem [shape: s32[16,1], index: 0, kind: input, shape index: {}]   ;;  %s557_s1 = inlined_call_operand.vmem [shape: f32[16,32], index: 1, kind: input, shape index: {}]   ;;  %s558_s2 = inlined_call_operand.hbm [shape: bf16[32,128], index: 2, kind: input, shape index: {}]   ;;  %s559_s3 = inlined_call_operand.vmem [shape: f32[16,1], index: 3, kind: output, shape index: {}]  }
   0x1   :  { %s18_s13 = sshll.u32 %s443_s12, 4  ;;  %s419_s16 = scalar_lea.hbm %s558_s2, 256  ;;  %s19_s13 = int_to_ptr.vmem [resolvable:$true] %s18_s13 }
   0x2   :  { %p420_p0 = scmp.ne.s32.totalorder %s558_s2, %s419_s16  ;;  %p423_p1 = scmp.lt.u32.totalorder %s419_s16, %s558_s2 }
   0x4   :  { %p425_p2 = pnand %p423_p1, %p420_p0 }
   0x6   :  { %428 = shalt.err (!%p425_p2)
}
   0x7   :  { %s429_s21 = scalar_lea.vmem %s19_s13, 256  ;;  %p434_p4 = scmp.lt.s32.totalorder %s19_s13, %s19_s13 }
   0x8   :  { %p430_p3 = scmp.ne.s32.totalorder %s19_s13, %s429_s21  ;;  %p435_p5 = scmp.lt.s32.totalorder %s429_s21, %s429_s21 }
   0xa   :  { %p436_p6 = por %p435_p5, %p434_p4 }
   0xc   :  { %p437_p7 = pnand %p436_p6, %p430_p3 }
   0xe   :  { %440 = shalt.err (!%p437_p7)
}
   0xf   :  { %s444_s22 = smov 64   ;;  %s445_s23 = smov 4  }
  0x10   :  { %24 = dma.hbm_to_vmem [thread:$0]  %s558_s2, 256, %s19_s13, [#allocation9], %s444_s22, %s444_s22, %s445_s23  }
  0x11   :  { %441 = dma.done.wait [#allocation9], 256  }
  0x12   :  { %442 = vsyncadd [#allocation9], 4294967040  ;;  %v33_v0 = vld [vmem:[%s557_s1] sm:$0xff]  ;;  %vm37_vm0 = vcmask 261120   ;;  %v34_v1 = vld [vmem:[%s557_s1 + $0x8] sm:$0xff]  ;;  %vm58_vm1 = vcmask 7168   ;;  %v157_v33 = vlaneseq }
  0x13   :  { %v35_v2 = vmul.f32 %v33_v0, %v33_v0  ;;  %v36_v3 = vmul.f32 %v34_v1, %v34_v1  ;;  %v395_v6 = vld [vmem:[#allocation8] sm:$0xff]   ;;  %v446_v7 = vmov 0.0   ;;  %v447_v8 = vmov 0   ;;  %v396_v9 = vld [vmem:[#allocation8 + $0x8] sm:$0xff]   ;;  %v160_v55 = vld [vmem:[%s556_s0 + $0x8] sm:$0xff] }
  0x14   :  { %378 = vmatprep.subr.bf16.mxu0 %v446_v7  ;;  %364 = vst.msk [vmem:[%s559_s3 + $0x8] sm:$0xff] %vm58_vm1, %v446_v7  ;;  %71 = vst.msk [vmem:[#allocation5] sm:$0xff] %vm58_vm1, %v446_v7  ;;  %393 = vset.pattern.permute.xlu1 %v447_v8  ;;  %vm448_vm2 = vmmov 0   ;;  %v449_v32 = vmov -inf   ;;  %v158_v35 = vand.u32 127, %v157_v33  ;;  %v159_v47 = vld [vmem:[%s556_s0] sm:$0xff] }
  0x15   :  { %v38_v4 = vsel %vm37_vm0, %v35_v2, 0.0  ;;  %v41_v5 = vsel %vm37_vm0, %v36_v3, 0.0  ;;  %72 = vst.msk [vmem:[#allocation5 + $0x8] sm:$0xff] %vm58_vm1, %v446_v7  ;;  %73 = vst.msk [vmem:[#allocation6] sm:$0xff] %vm58_vm1, %v446_v7  ;;  %379 = vmatpush3.bf16.msra.mxu0 %v395_v6  ;;  %394 = vset.pattern.permute.xlu0 %v447_v8 }
  0x16   :  { %39 = vadd.xlane.f32.xlu0 %v38_v4  ;;  %74 = vst.msk [vmem:[#allocation6 + $0x8] sm:$0xff] %vm58_vm1, %v446_v7  ;;  %75 = vst.msk [vmem:[#allocation7] sm:$0xff] %vm58_vm1, %v446_v7  ;;  %380 = vmatprep.subr.bf16.mxu0 %v446_v7  ;;  %vm188_vm7 = vcmp.lt.s32.totalorder %v158_v35, 16 }
  0x17   :  { %76 = vst.msk [vmem:[#allocation7 + $0x8] sm:$0xff] %vm58_vm1, %v446_v7  ;;  %382 = vmatprep.mubr.msk.bf16.mxu0 %vm448_vm2, %v446_v7  ;;  %69 = vst.msk [vmem:[#allocation4] sm:$0xff] %vm58_vm1, %v449_v32 }
  0x18   :  { %70 = vst.msk [vmem:[#allocation4 + $0x8] sm:$0xff] %vm58_vm1, %v449_v32 }
  0x19   :  { %381 = vmatpush3.bf16.msra.mxu0 %v396_v9 }
  0x1a   :  { %42 = vadd.xlane.f32.xlu0 %v41_v5 }
  0x1c   :  { %v235_v9 = vld [vmem:[#allocation6] sm:$0xff] }
  0x1d   :  { %v173_v5 = vld [vmem:[#allocation7] sm:$0xff] }
  0x1e   :  { %v514_v48 = vld [vmem:[#allocation4] sm:$0xff] }
  0x1f   :  { %v516_v50 = vld [vmem:[#allocation4 + $0x8] sm:$0xff] }
  0xa3   :  { %v40_v10 = vpop.xlane.xlu0 %39 }
  0xa4   :  { %397 = vrsqrt.f32 %v40_v10  ;;  %v61_v11 = vmax.f32 %v40_v10, 1e-24  ;;  %vm46_vm3 = vcmp.eq.f32.partialorder %v40_v10, inf  ;;  %v49_v16 = vand.u32 2147483648, %v40_v10 }
  0xa5   :  { %vm48_vm4 = vcmp.eq.f32.partialorder %v40_v10, 0.0 }
  0xa7   :  { %v43_v12 = vpop.xlane.xlu0 %42 }
  0xa8   :  { %399 = vrsqrt.f32 %v43_v12  ;;  %v62_v13 = vmax.f32 %v43_v12, 1e-24  ;;  %vm53_vm5 = vcmp.eq.f32.partialorder %v43_v12, inf  ;;  %v56_v22 = vand.u32 2147483648, %v43_v12 }
  0xa9   :  { %401 = vrsqrt.f32 %v61_v11  ;;  %vm55_vm6 = vcmp.eq.f32.partialorder %v43_v12, 0.0 }
  0xaa   :  { %403 = vrsqrt.f32 %v62_v13 }
  0xae   :  { %v398_v14 = vpop.eup %397 }
  0xaf   :  { %v45_v15 = vmul.f32 %v398_v14, %v40_v10 }
  0xb1   :  { %v47_v17 = vsel %vm46_vm3, %v40_v10, %v45_v15 }
  0xb2   :  { %v400_v18 = vpop.eup %399  ;;  %v50_v19 = vsel %vm48_vm4, %v49_v16, %v47_v17 }
  0xb3   :  { %v402_v20 = vpop.eup %401  ;;  %59 = vst.msk [vmem:[#allocation3] sm:$0xff] %vm58_vm1, %v50_v19  ;;  %v52_v21 = vmul.f32 %v400_v18, %v43_v12 }
  0xb4   :  { %v404_v23 = vpop.eup %403  ;;  %v65_v25 = vmul.f32 %v402_v20, %v33_v0 }
  0xb5   :  { %v54_v24 = vsel %vm53_vm5, %v43_v12, %v52_v21  ;;  %v66_v27 = vmul.f32 %v404_v23, %v34_v1 }
  0xb6   :  { %v57_v26 = vsel %vm55_vm6, %v56_v22, %v54_v24 }
  0xb7   :  { %60 = vst.msk [vmem:[#allocation3 + $0x8] sm:$0xff] %vm58_vm1, %v57_v26  ;;  %v67_v28 = vpack.c.bf16 %v66_v27, %v65_v25 }
  0xb9   :  { %68 = vst.msk [vmem:[#allocation2] sm:$0xff] %vm37_vm0, %v67_v28 }
  0xba   :  { %v505_v29 = vld [vmem:[#allocation3] sm:$0xff] }
  0xbb   :  { %147 = vperm.xlu1 %393, %v505_v29  }
  0xbe   :  { %v144_v30 = vld [vmem:[#allocation3 + $0x8] sm:$0xff] }
  0xbf   :  { %152 = vperm.xlu1 %393, %v144_v30  }
  0xc0   :  { %v77_v31 = vld [vmem:[#allocation2] sm:$0xff] }
  0xc1   :  { %383 = vmatmul.mubr.msk.bf16.vlgmr.msra.gmra.mrb[0].mxu0 %vm37_vm0, %v77_v31 }
 0x13a   :  { %v148_v34 = vpop.permute.xlu1 %147 }
 0x13e   :  { %v153_v43 = vpop.permute.xlu1 %152 }
 0x194   :  { %v132_v36 = vpop.f32.mrb[0].mxu0 }
 0x195   :  { %v373_v37 = vclamps-f32 %v132_v36, 1.0  ;;  %v384_v38 = vpop.f32.mrb[1].mxu0 }
 0x196   :  { %v135_v39 = vpop.f32.mrb[2].mxu0 }
 0x197   :  { %v374_v40 = vclamps-f32 %v135_v39, 1.0  ;;  %v385_v41 = vpop.f32.mrb[3].mxu0  ;;  %v155_v42 = vmul.f32 %v373_v37, %v148_v34  ;;  %v174_v39 = vld [vmem:[#allocation7 + $0x8] sm:$0xff] }
 0x199   :  { %v189_v44 = vsel %vm188_vm7, %v155_v42, -inf  ;;  %v156_v45 = vmul.f32 %v374_v40, %v153_v43 }
 0x19a   :  { %191 = vmax.xlane.f32.xlu0 %v189_v44 }
 0x19b   :  { %v190_v46 = vsel %vm188_vm7, %v156_v45, -inf }
 0x19c   :  { %193 = vmax.xlane.f32.xlu1 %v190_v46 }
 0x1b0   :  { %166 = vperm.xlu0 %394, %v159_v47  }
 0x227   :  { %v192_v49 = vpop.xlane.xlu0 %191 }
 0x228   :  { %v519_v51 = vmax.f32 %v514_v48, %v192_v49 }
 0x229   :  { %v194_v52 = vpop.xlane.xlu1 %193 }
 0x22a   :  { %v199_v53 = vsub.f32 %v514_v48, %v519_v51  ;;  %233 = vst.msk [vmem:[#allocation4] sm:$0xff] %vm58_vm1, %v519_v51  ;;  %v526_v54 = vmax.f32 %v516_v50, %v194_v52  ;;  %211 = vperm.xlu1 %393, %v519_v51   ;;  %v205_v48 = vld [vmem:[#allocation5] sm:$0xff] }
 0x22c   :  { %v200_v56 = vsub.f32 %v516_v50, %v526_v54  ;;  %234 = vst.msk [vmem:[#allocation4 + $0x8] sm:$0xff] %vm58_vm1, %v526_v54  ;;  %216 = vperm.xlu0 %394, %v526_v54   ;;  %v206_v50 = vld [vmem:[#allocation5 + $0x8] sm:$0xff] }
 0x22e   :  { %169 = vperm.xlu1 %393, %v160_v55  }
 0x22f   :  { %v167_v57 = vpop.permute.xlu0 %166 }
 0x230   :  { %vm171_vm8 = vcmp.eq.s32.totalorder %v158_v35, %v167_v57  ;;  %v236_v57 = vld [vmem:[#allocation6 + $0x8] sm:$0xff] }
 0x231   :  { %v175_v58 = vsel %vm171_vm8, %v373_v37, 0.0 }
 0x24b   :  { %177 = vadd.xlane.f32.xlu0 %v175_v58 }
 0x24f   :  { %237 = vadd.xlane.f32.xlu0 %v155_v42 }
 0x2a9   :  { %v212_v59 = vpop.permute.xlu1 %211 }
 0x2aa   :  { %v219_v60 = vsub.f32 %v189_v44, %v212_v59 }
 0x2ab   :  { %v217_v61 = vpop.permute.xlu0 %216 }
 0x2ac   :  { %v221_v62 = vmul.f32 1.442695, %v219_v60  ;;  %v220_v63 = vsub.f32 %v190_v46, %v217_v61 }
 0x2ad   :  { %v170_v0 = vpop.permute.xlu1 %169 }
 0x2ae   :  { %405 = vpow2.f32 %v221_v62  ;;  %v223_v1 = vmul.f32 1.442695, %v220_v63  ;;  %vm172_vm9 = vcmp.eq.s32.totalorder %v158_v35, %v170_v0  ;;  %v201_v35 = vmul.f32 1.442695, %v199_v53 }
 0x2af   :  { %v176_v2 = vsel %vm172_vm9, %v374_v40, 0.0  ;;  %v310_v40 = vld [vmem:[#allocation4] sm:$0xff] }
 0x2b0   :  { %407 = vpow2.f32 %v223_v1  ;;  %179 = vadd.xlane.f32.xlu0 %v176_v2 }
 0x2b1   :  { %409 = vpow2.f32 %v201_v35 }
 0x2b8   :  { %v406_v3 = vpop.eup %405 }
 0x2b9   :  { %225 = vadd.xlane.f32.xlu1 %v406_v3 }
 0x2ba   :  { %v408_v4 = vpop.eup %407 }
 0x2bb   :  { %227 = vadd.xlane.f32.xlu0 %v408_v4 }
 0x2bd   :  { %239 = vadd.xlane.f32.xlu1 %v156_v45  ;;  %v410_v45 = vpop.eup %409 }
 0x2be   :  { %v207_v51 = vmul.f32 %v410_v45, %v205_v48 }
 0x2d8   :  { %v178_v6 = vpop.xlane.xlu0 %177 }
 0x2d9   :  { %v181_v7 = vadd.f32 %v178_v6, %v173_v5 }
 0x2db   :  { %184 = vst.msk [vmem:[#allocation7] sm:$0xff] %vm58_vm1, %v181_v7 }
 0x2dc   :  { %v238_v10 = vpop.xlane.xlu0 %237 }
 0x2dd   :  { %v241_v11 = vadd.f32 %v238_v10, %v235_v9 }
 0x2df   :  { %243 = vst.msk [vmem:[#allocation6] sm:$0xff] %vm58_vm1, %v241_v11 }
 0x2e2   :  { %v250_v12 = vld [vmem:[#allocation7] sm:$0xff] }
 0x2e3   :  { %vm262_vm10 = vcmp.le.f32.partialorder %v250_v12, 0.70710677  ;;  %vm266_vm11 = vcmp.le.f32.partialorder %v250_v12, 1.7948966e-09  ;;  %vm272_vm12 = vcmp.le.f32.partialorder %v250_v12, -0.70710677  ;;  %v252_v20 = vmul.f32 %v250_v12, %v250_v12 }
 0x2e4   :  { %v264_v13 = vsel %vm262_vm10, 1, %v447_v8  ;;  %v268_v14 = vsel %vm266_vm11, 1, %v447_v8  ;;  %v274_v16 = vsel %vm272_vm12, 1, %v447_v8  ;;  %vm278_vm13 = vcmp.le.f32.partialorder %v250_v12, -1.0 }
 0x2e5   :  { %v270_v15 = vadd.s32 %v268_v14, %v264_v13  ;;  %v280_v18 = vsel %vm278_vm13, 1, %v447_v8  ;;  %v254_v22 = vmul.f32 8.0, %v252_v20  ;;  %v203_v8 = vmul.f32 1.442695, %v200_v56 }
 0x2e6   :  { %v300_v37 = vmul.f32 %v250_v12, %v505_v29  ;;  %v338_v4 = vld [vmem:[#allocation6] sm:$0xff] }
 0x2e7   :  { %v276_v17 = vadd.s32 %v274_v16, %v270_v15  ;;  %v256_v24 = vmul.f32 %v254_v22, %v252_v20  ;;  %411 = vpow2.f32 %v203_v8 }
 0x2e8   :  { %v314_v43 = vsub.f32 %v300_v37, %v310_v40 }
 0x2e9   :  { %v282_v19 = vadd.s32 %v280_v18, %v276_v17  ;;  %v258_v26 = vsub.f32 %v256_v24, %v254_v22 }
 0x2ea   :  { %v316_v46 = vmul.f32 1.442695, %v314_v43 }
 0x2eb   :  { %v284_v21 = vand.u32 1, %v282_v19  ;;  %v260_v28 = vadd.f32 1.0, %v258_v26  ;;  %v294_v30 = vcvt.s32.f32 %v282_v19 }
 0x2ec   :  { %413 = vpow2.f32 %v316_v46 }
 0x2ed   :  { %v286_v23 = vcvt.s32.f32 %v284_v21  ;;  %v296_v32 = vmul.f32 2.0, %v294_v30 }
 0x2ef   :  { %v288_v25 = vmul.f32 2.0, %v286_v23 }
 0x2f1   :  { %v290_v27 = vsub.f32 1.0, %v288_v25  ;;  %v412_v49 = vpop.eup %411 }
 0x2f2   :  { %v208_v55 = vmul.f32 %v412_v49, %v206_v50 }
 0x2f3   :  { %v292_v31 = vmul.f32 %v290_v27, %v260_v28 }
 0x2f5   :  { %v298_v33 = vsub.f32 %v292_v31, %v296_v32 }
 0x2f6   :  { %v414_v60 = vpop.eup %413 }
 0x2f7   :  { %v302_v34 = vsub.f32 %v298_v33, %v250_v12 }
 0x2f9   :  { %v304_v36 = vmul.f32 0.001118747, %v302_v34 }
 0x2fb   :  { %v306_v38 = vadd.f32 %v304_v36, %v250_v12 }
 0x2fd   :  { %v308_v42 = vmul.f32 %v306_v38, %v505_v29 }
 0x2ff   :  { %v324_v47 = vsub.f32 %v308_v42, %v310_v40  ;;  %v340_v2 = vsub.f32 %v308_v42, %v300_v37  ;;  %v344_v7 = vmul.f32 0.9, %v308_v42 }
 0x301   :  { %v326_v52 = vmul.f32 1.442695, %v324_v47  ;;  %v342_v5 = vadd.f32 %v340_v2, %v338_v4 }
 0x303   :  { %415 = vpow2.f32 %v326_v52  ;;  %v348_v10 = vmul.f32 0.00625, %v342_v5 }
 0x30d   :  { %v416_v0 = vpop.eup %415 }
 0x33d   :  { %v180_v41 = vpop.xlane.xlu0 %179 }
 0x33e   :  { %v182_v44 = vadd.f32 %v180_v41, %v174_v39 }
 0x340   :  { %185 = vst.msk [vmem:[#allocation7 + $0x8] sm:$0xff] %vm58_vm1, %v182_v44 }
 0x346   :  { %v226_v53 = vpop.xlane.xlu1 %225 }
 0x347   :  { %v229_v54 = vadd.f32 %v226_v53, %v207_v51 }
 0x348   :  { %v228_v56 = vpop.xlane.xlu0 %227 }
 0x349   :  { %231 = vst.msk [vmem:[#allocation5] sm:$0xff] %vm58_vm1, %v229_v54  ;;  %v230_v29 = vadd.f32 %v228_v56, %v208_v55 }
 0x34a   :  { %v240_v58 = vpop.xlane.xlu1 %239 }
 0x34b   :  { %232 = vst.msk [vmem:[#allocation5 + $0x8] sm:$0xff] %vm58_vm1, %v230_v29  ;;  %v242_v59 = vadd.f32 %v240_v58, %v236_v57 }
 0x34d   :  { %244 = vst.msk [vmem:[#allocation6 + $0x8] sm:$0xff] %vm58_vm1, %v242_v59 }
 0x350   :  { %v312_v61 = vld [vmem:[#allocation5] sm:$0xff] }
 0x351   :  { %v320_v62 = vsub.f32 %v312_v61, %v414_v60 }
 0x353   :  { %v322_v63 = vmax.f32 %v320_v62, 0.0 }
 0x355   :  { %v330_v1 = vadd.f32 %v416_v0, %v322_v63 }
 0x357   :  { %417 = vlog2.f32 %v330_v1 }
 0x361   :  { %v418_v3 = vpop.eup %417 }
 0x362   :  { %v333_v6 = vmul.f32 0.6931472, %v418_v3 }
 0x364   :  { %v336_v9 = vadd.f32 %v333_v6, %v310_v40 }
 0x366   :  { %v346_v11 = vsub.f32 %v336_v9, %v344_v7 }
 0x368   :  { %v350_v12 = vsub.f32 %v346_v11, %v348_v10 }
 0x36a   :  { %363 = vst.msk [vmem:[%s559_s3] sm:$0xff] %vm58_vm1, %v350_v12 }
 0x36b   :  { %369 = vsyncpa [#allocation9], 1 }

</bundles_post_ra>
